<compile_context>
chip_gen: v7x
topology: tpu7x:2x2x1
jax: 0.10.0
libtpu: 0.0.40
codegen_flags: <defaults>
</compile_context>

<pallas_src>
import functools
import math

import jax
import jax.numpy as jnp
from jax.experimental import pallas as pl
from jax.experimental.pallas import tpu as pltpu


def _round_up(x, m):
    return ((x + m - 1) // m) * m


def _build_relu_flags(encoder_layers, decoder_layers):
    """ReLU after every Linear except the last of each stack (matches the torch
    construction: k <= num_relu_needed-1 -> Linear+ReLU; k == num_relu_needed -> Linear)."""
    n_enc = len(encoder_layers) - 1
    n_dec = len(decoder_layers) - 1
    return tuple([True] * (n_enc - 1) + [False] + [True] * (n_dec - 1) + [False])


def init_torch_linear_params(encoder_layers, decoder_layers, key):
    """Deterministic init mimicking torch.nn.Linear's U(-1/sqrt(fan_in), 1/sqrt(fan_in)).
    PyTorch layout: W (out_features, in_features), b (out_features,)."""
    assert encoder_layers[-1] == decoder_layers[0]
    assert encoder_layers[0] == decoder_layers[-1]
    dims = list(zip(encoder_layers[:-1], encoder_layers[1:])) + \
           list(zip(decoder_layers[:-1], decoder_layers[1:]))
    params = []
    for fan_in, fan_out in dims:
        key, kw, kb = jax.random.split(key, 3)
        bound = 1.0 / math.sqrt(fan_in)
        w = jax.random.uniform(kw, (fan_out, fan_in), jnp.float32, -bound, bound)
        b = jax.random.uniform(kb, (fan_out,), jnp.float32, -bound, bound)
        params.append((w, b))
    return params


def prepare_params(params, relu_flags, *, io_dtype=jnp.float32):
    """One-time, off-hot-path param prep:
      1) fuse adjacent Linear pairs that have no ReLU between them
         (W' = W2 @ W1, b' = W2 @ b1 + b2),
      2) transpose weights to (in, out) so the kernel computes h @ Wt,
      3) cast weights to the I/O dtype (bf16 path halves HBM weight bytes);
         biases stay f32 (bias-add / ReLU are f32 on-chip on all generations).
    Returns (prepared_params, fused_relu_flags)."""
    fused, fused_flags = [], []
    i = 0
    while i < len(params):
        w, b = params[i]            # (out, in), (out,)
        flag = relu_flags[i]
        while (not flag) and (i + 1 < len(params)):
            w2, b2 = params[i + 1]
            w = w2 @ w
            b = w2 @ b + b2
            flag = relu_flags[i + 1]
            i += 1
        fused.append((w, b))
        fused_flags.append(flag)
        i += 1
    prepared = [(jnp.asarray(w.T, dtype=io_dtype),
                 jnp.asarray(b, jnp.float32).reshape(1, -1))
                for (w, b) in fused]
    return prepared, tuple(fused_flags)


def _ae_kernel(*refs, relu_flags):
    # refs = (x_ref, Wt0_ref, b0_ref, Wt1_ref, b1_ref, ..., out_ref)
    # x_ref:   (TILE_B, f_in)      batch on sublanes, features contiguous on lanes
    # Wt_k:    (in_k, out_k)       MXU-stationary weights (VMEM-resident)
    # b_k:     (1, out_k)  f32
    # out_ref: (TILE_B, f_out)
    x_ref = refs[0]
    out_ref = refs[-1]

    h = x_ref[...]
    for i, relu in enumerate(relu_flags):
        wt = refs[1 + 2 * i][...]
        b = refs[2 + 2 * i][...]
        # Matmul operands in the weight dtype (f32 or bf16); f32 accumulation.
        h = jnp.dot(h.astype(wt.dtype), wt, preferred_element_type=jnp.float32) + b
        if relu:
            h = jnp.maximum(h, 0.0)
    out_ref[...] = h.astype(out_ref.dtype)


def deep_autoencoder_forward(x, prepared_params, relu_flags, *, tile_b=2048):
    """x: (B, fom_size). prepared_params: list of (Wt (in,out), b (1,out)) from
    prepare_params. Returns (B, fom_size) in x.dtype."""
    B, f_in = x.shape
    f_out = prepared_params[-1][0].shape[1]

    # Batch rows sit on the sublane axis -> tile granularity is 8, not 128.
    tile_b = max(8, min(_round_up(tile_b, 8), _round_up(B, 8)))
    grid = (pl.cdiv(B, tile_b),)

    flat_args = [x]
    in_specs = [pl.BlockSpec((tile_b, f_in), lambda i: (i, 0))]
    for (wt, b) in prepared_params:
        flat_args.append(wt)
        flat_args.append(b)
        # Full-array blocks with a constant block index: params stay VMEM-resident
        # across all batch-grid iterations (no re-DMA).
        in_specs.append(pl.BlockSpec(wt.shape, lambda i: (0, 0)))
        in_specs.append(pl.BlockSpec(b.shape, lambda i: (0, 0)))
    out_spec = pl.BlockSpec((tile_b, f_out), lambda i: (i, 0))

    flops = int(2 * B * sum(wt.shape[0] * wt.shape[1] for wt, _ in prepared_params))
    bytes_accessed = int(
        x.size * x.dtype.itemsize
        + B * f_out * x.dtype.itemsize
        + sum(wt.size * wt.dtype.itemsize + b.size * b.dtype.itemsize
              for wt, b in prepared_params))

    kernel = functools.partial(_ae_kernel, relu_flags=relu_flags)

    return pl.pallas_call(
        kernel,
        out_shape=jax.ShapeDtypeStruct((B, f_out), x.dtype),
        grid=grid,
        in_specs=in_specs,
        out_specs=out_spec,
        compiler_params=pltpu.CompilerParams(
            dimension_semantics=("parallel",),  # shard batch tiles across TCs on v7x
        ),
        cost_estimate=pl.CostEstimate(
            flops=flops, transcendentals=0, bytes_accessed=bytes_accessed),
    )(*flat_args)


def reference_forward(x, params, relu_flags):
    """Pure-JAX reference on the original (unfused, PyTorch-layout) params."""
    h = x
    for (w, b), r in zip(params, relu_flags):
        h = h @ w.T + b
        if r:
            h = jnp.maximum(h, 0.0)
    return h


if __name__ == "__main__":
    encoder_layers = [64, 32, 16, 8]
    decoder_layers = [8, 16, 32, 64]
    relu_flags = _build_relu_flags(encoder_layers, decoder_layers)

    key = jax.random.PRNGKey(0)
    key, kx = jax.random.split(key)
    params = init_torch_linear_params(encoder_layers, decoder_layers, key)

    # --- f32 path, tiny batch (single block) -------------------------------
    B = 8
    x = jax.random.normal(kx, (B, encoder_layers[0]), jnp.float32)
    prepared_f32, fused_flags = prepare_params(params, relu_flags, io_dtype=jnp.float32)
    out = jax.block_until_ready(deep_autoencoder_forward(x, prepared_f32, fused_flags))
    ref = reference_forward(x, params, relu_flags)
    assert out.shape == (B, encoder_layers[0])
    assert jnp.allclose(out, ref, atol=1e-5, rtol=1e-4), \
        float(jnp.max(jnp.abs(out - ref)))

    # --- multi-tile path with a partial edge block (no padding, no transposes)
    key, kx2 = jax.random.split(key)
    B2 = 300
    x2 = jax.random.normal(kx2, (B2, encoder_layers[0]), jnp.float32)
    out2 = jax.block_until_ready(
        deep_autoencoder_forward(x2, prepared_f32, fused_flags, tile_b=128))
    ref2 = reference_forward(x2, params, relu_flags)
    assert out2.shape == (B2, encoder_layers[0])
    assert jnp.allclose(out2, ref2, atol=1e-5, rtol=1e-4), \
        float(jnp.max(jnp.abs(out2 - ref2)))

    # --- optional bf16 HBM-boundary path (f32 accumulation inside the kernel)
    prepared_bf16, _ = prepare_params(params, relu_flags, io_dtype=jnp.bfloat16)
    out_bf = jax.block_until_ready(
        deep_autoencoder_forward(x2.astype(jnp.bfloat16), prepared_bf16,
                                 fused_flags, tile_b=128))
    assert out_bf.dtype == jnp.bfloat16
    assert jnp.allclose(out_bf.astype(jnp.float32), ref2, atol=1e-1, rtol=1e-1)

    print("KERNEL_OK")
</pallas_src>

<mosaic_0001>
module attributes {stable_mosaic.version = 11 : i64} {
  func.func @_ae_kernel(%arg0: i32, %arg1: memref<8x64xf32, #tpu.memory_space<vmem>>, %arg2: memref<64x32xf32, #tpu.memory_space<vmem>>, %arg3: memref<1x32xf32, #tpu.memory_space<vmem>>, %arg4: memref<32x16xf32, #tpu.memory_space<vmem>>, %arg5: memref<1x16xf32, #tpu.memory_space<vmem>>, %arg6: memref<16x16xf32, #tpu.memory_space<vmem>>, %arg7: memref<1x16xf32, #tpu.memory_space<vmem>>, %arg8: memref<16x32xf32, #tpu.memory_space<vmem>>, %arg9: memref<1x32xf32, #tpu.memory_space<vmem>>, %arg10: memref<32x64xf32, #tpu.memory_space<vmem>>, %arg11: memref<1x64xf32, #tpu.memory_space<vmem>>, %arg12: memref<8x64xf32, #tpu.memory_space<vmem>>) attributes {dimension_semantics = [#tpu.dimension_semantics<parallel>], iteration_bounds = array<i64: 1>, scalar_prefetch = 0 : i64, scratch_operands = 0 : i64, tpu.core_type = #tpu.core_type<tc>, window_params = [{transform_indices = @transform_0, window_bounds = array<i64: 8, 64>}, {pipeline_mode = #tpu.pipeline_mode<synchronous>, transform_indices = @transform_1, window_bounds = array<i64: 64, 32>}, {pipeline_mode = #tpu.pipeline_mode<synchronous>, transform_indices = @transform_2, window_bounds = array<i64: 1, 32>}, {pipeline_mode = #tpu.pipeline_mode<synchronous>, transform_indices = @transform_3, window_bounds = array<i64: 32, 16>}, {pipeline_mode = #tpu.pipeline_mode<synchronous>, transform_indices = @transform_4, window_bounds = array<i64: 1, 16>}, {pipeline_mode = #tpu.pipeline_mode<synchronous>, transform_indices = @transform_5, window_bounds = array<i64: 16, 16>}, {pipeline_mode = #tpu.pipeline_mode<synchronous>, transform_indices = @transform_6, window_bounds = array<i64: 1, 16>}, {pipeline_mode = #tpu.pipeline_mode<synchronous>, transform_indices = @transform_7, window_bounds = array<i64: 16, 32>}, {pipeline_mode = #tpu.pipeline_mode<synchronous>, transform_indices = @transform_8, window_bounds = array<i64: 1, 32>}, {pipeline_mode = #tpu.pipeline_mode<synchronous>, transform_indices = @transform_9, window_bounds = array<i64: 32, 64>}, {pipeline_mode = #tpu.pipeline_mode<synchronous>, transform_indices = @transform_10, window_bounds = array<i64: 1, 64>}, {transform_indices = @transform_11, window_bounds = array<i64: 8, 64>}]} {
    %c0 = arith.constant 0 : index
    %c0_0 = arith.constant 0 : index
    %0 = vector.load %arg1[%c0, %c0_0] : memref<8x64xf32, #tpu.memory_space<vmem>>, vector<8x64xf32>
    %c0_1 = arith.constant 0 : index
    %c0_2 = arith.constant 0 : index
    %1 = vector.load %arg2[%c0_1, %c0_2] : memref<64x32xf32, #tpu.memory_space<vmem>>, vector<64x32xf32>
    %c0_3 = arith.constant 0 : index
    %c0_4 = arith.constant 0 : index
    %2 = vector.load %arg3[%c0_3, %c0_4] : memref<1x32xf32, #tpu.memory_space<vmem>>, vector<1x32xf32>
    %cst = arith.constant dense<0.000000e+00> : vector<8x32xf32>
    %3 = tpu.matmul %0, %1, %cst {dimension_numbers = #tpu.dot_dimension_numbers<[1], [0], [0], [1], [0, 0, 1, 1], [], []>} : vector<8x64xf32>, vector<64x32xf32>, vector<8x32xf32> -> vector<8x32xf32>
    %4 = vector.broadcast %2 : vector<1x32xf32> to vector<8x32xf32>
    %5 = arith.addf %3, %4 : vector<8x32xf32>
    %cst_5 = arith.constant 0.000000e+00 : f32
    %6 = vector.broadcast %cst_5 : f32 to vector<8x32xf32>
    %7 = arith.maximumf %5, %6 : vector<8x32xf32>
    %c0_6 = arith.constant 0 : index
    %c0_7 = arith.constant 0 : index
    %8 = vector.load %arg4[%c0_6, %c0_7] : memref<32x16xf32, #tpu.memory_space<vmem>>, vector<32x16xf32>
    %c0_8 = arith.constant 0 : index
    %c0_9 = arith.constant 0 : index
    %9 = vector.load %arg5[%c0_8, %c0_9] : memref<1x16xf32, #tpu.memory_space<vmem>>, vector<1x16xf32>
    %cst_10 = arith.constant dense<0.000000e+00> : vector<8x16xf32>
    %10 = tpu.matmul %7, %8, %cst_10 {dimension_numbers = #tpu.dot_dimension_numbers<[1], [0], [0], [1], [0, 0, 1, 1], [], []>} : vector<8x32xf32>, vector<32x16xf32>, vector<8x16xf32> -> vector<8x16xf32>
    %11 = vector.broadcast %9 : vector<1x16xf32> to vector<8x16xf32>
    %12 = arith.addf %10, %11 : vector<8x16xf32>
    %cst_11 = arith.constant 0.000000e+00 : f32
    %13 = vector.broadcast %cst_11 : f32 to vector<8x16xf32>
    %14 = arith.maximumf %12, %13 : vector<8x16xf32>
    %c0_12 = arith.constant 0 : index
    %c0_13 = arith.constant 0 : index
    %15 = vector.load %arg6[%c0_12, %c0_13] : memref<16x16xf32, #tpu.memory_space<vmem>>, vector<16x16xf32>
    %c0_14 = arith.constant 0 : index
    %c0_15 = arith.constant 0 : index
    %16 = vector.load %arg7[%c0_14, %c0_15] : memref<1x16xf32, #tpu.memory_space<vmem>>, vector<1x16xf32>
    %cst_16 = arith.constant dense<0.000000e+00> : vector<8x16xf32>
    %17 = tpu.matmul %14, %15, %cst_16 {dimension_numbers = #tpu.dot_dimension_numbers<[1], [0], [0], [1], [0, 0, 1, 1], [], []>} : vector<8x16xf32>, vector<16x16xf32>, vector<8x16xf32> -> vector<8x16xf32>
    %18 = vector.broadcast %16 : vector<1x16xf32> to vector<8x16xf32>
    %19 = arith.addf %17, %18 : vector<8x16xf32>
    %cst_17 = arith.constant 0.000000e+00 : f32
    %20 = vector.broadcast %cst_17 : f32 to vector<8x16xf32>
    %21 = arith.maximumf %19, %20 : vector<8x16xf32>
    %c0_18 = arith.constant 0 : index
    %c0_19 = arith.constant 0 : index
    %22 = vector.load %arg8[%c0_18, %c0_19] : memref<16x32xf32, #tpu.memory_space<vmem>>, vector<16x32xf32>
    %c0_20 = arith.constant 0 : index
    %c0_21 = arith.constant 0 : index
    %23 = vector.load %arg9[%c0_20, %c0_21] : memref<1x32xf32, #tpu.memory_space<vmem>>, vector<1x32xf32>
    %cst_22 = arith.constant dense<0.000000e+00> : vector<8x32xf32>
    %24 = tpu.matmul %21, %22, %cst_22 {dimension_numbers = #tpu.dot_dimension_numbers<[1], [0], [0], [1], [0, 0, 1, 1], [], []>} : vector<8x16xf32>, vector<16x32xf32>, vector<8x32xf32> -> vector<8x32xf32>
    %25 = vector.broadcast %23 : vector<1x32xf32> to vector<8x32xf32>
    %26 = arith.addf %24, %25 : vector<8x32xf32>
    %cst_23 = arith.constant 0.000000e+00 : f32
    %27 = vector.broadcast %cst_23 : f32 to vector<8x32xf32>
    %28 = arith.maximumf %26, %27 : vector<8x32xf32>
    %c0_24 = arith.constant 0 : index
    %c0_25 = arith.constant 0 : index
    %29 = vector.load %arg10[%c0_24, %c0_25] : memref<32x64xf32, #tpu.memory_space<vmem>>, vector<32x64xf32>
    %c0_26 = arith.constant 0 : index
    %c0_27 = arith.constant 0 : index
    %30 = vector.load %arg11[%c0_26, %c0_27] : memref<1x64xf32, #tpu.memory_space<vmem>>, vector<1x64xf32>
    %cst_28 = arith.constant dense<0.000000e+00> : vector<8x64xf32>
    %31 = tpu.matmul %28, %29, %cst_28 {dimension_numbers = #tpu.dot_dimension_numbers<[1], [0], [0], [1], [0, 0, 1, 1], [], []>} : vector<8x32xf32>, vector<32x64xf32>, vector<8x64xf32> -> vector<8x64xf32>
    %32 = vector.broadcast %30 : vector<1x64xf32> to vector<8x64xf32>
    %33 = arith.addf %31, %32 : vector<8x64xf32>
    %c0_29 = arith.constant 0 : index
    %c0_30 = arith.constant 0 : index
    %34 = vector.load %arg12[%c0_29, %c0_30] : memref<8x64xf32, #tpu.memory_space<vmem>>, vector<8x64xf32>
    tpu.vector_store %arg12[%c0_29, %c0_30], %33 {strides = array<i32>} : memref<8x64xf32, #tpu.memory_space<vmem>>, vector<8x64xf32>,
    return
  }
  func.func @transform_0(%arg0: i32) -> (i32, i32) {
    %c0_i32 = arith.constant 0 : i32
    %c0_i32_0 = arith.constant 0 : i32
    return %arg0, %c0_i32 : i32, i32
  }
  func.func @transform_1(%arg0: i32) -> (i32, i32) {
    %c0_i32 = arith.constant 0 : i32
    %c0_i32_0 = arith.constant 0 : i32
    %c0_i32_1 = arith.constant 0 : i32
    return %c0_i32, %c0_i32_0 : i32, i32
  }
  func.func @transform_2(%arg0: i32) -> (i32, i32) {
    %c0_i32 = arith.constant 0 : i32
    %c0_i32_0 = arith.constant 0 : i32
    %c0_i32_1 = arith.constant 0 : i32
    return %c0_i32, %c0_i32_0 : i32, i32
  }
  func.func @transform_3(%arg0: i32) -> (i32, i32) {
    %c0_i32 = arith.constant 0 : i32
    %c0_i32_0 = arith.constant 0 : i32
    %c0_i32_1 = arith.constant 0 : i32
    return %c0_i32, %c0_i32_0 : i32, i32
  }
  func.func @transform_4(%arg0: i32) -> (i32, i32) {
    %c0_i32 = arith.constant 0 : i32
    %c0_i32_0 = arith.constant 0 : i32
    %c0_i32_1 = arith.constant 0 : i32
    return %c0_i32, %c0_i32_0 : i32, i32
  }
  func.func @transform_5(%arg0: i32) -> (i32, i32) {
    %c0_i32 = arith.constant 0 : i32
    %c0_i32_0 = arith.constant 0 : i32
    %c0_i32_1 = arith.constant 0 : i32
    return %c0_i32, %c0_i32_0 : i32, i32
  }
  func.func @transform_6(%arg0: i32) -> (i32, i32) {
    %c0_i32 = arith.constant 0 : i32
    %c0_i32_0 = arith.constant 0 : i32
    %c0_i32_1 = arith.constant 0 : i32
    return %c0_i32, %c0_i32_0 : i32, i32
  }
  func.func @transform_7(%arg0: i32) -> (i32, i32) {
    %c0_i32 = arith.constant 0 : i32
    %c0_i32_0 = arith.constant 0 : i32
    %c0_i32_1 = arith.constant 0 : i32
    return %c0_i32, %c0_i32_0 : i32, i32
  }
  func.func @transform_8(%arg0: i32) -> (i32, i32) {
    %c0_i32 = arith.constant 0 : i32
    %c0_i32_0 = arith.constant 0 : i32
    %c0_i32_1 = arith.constant 0 : i32
    return %c0_i32, %c0_i32_0 : i32, i32
  }
  func.func @transform_9(%arg0: i32) -> (i32, i32) {
    %c0_i32 = arith.constant 0 : i32
    %c0_i32_0 = arith.constant 0 : i32
    %c0_i32_1 = arith.constant 0 : i32
    return %c0_i32, %c0_i32_0 : i32, i32
  }
  func.func @transform_10(%arg0: i32) -> (i32, i32) {
    %c0_i32 = arith.constant 0 : i32
    %c0_i32_0 = arith.constant 0 : i32
    %c0_i32_1 = arith.constant 0 : i32
    return %c0_i32, %c0_i32_0 : i32, i32
  }
  func.func @transform_11(%arg0: i32) -> (i32, i32) {
    %c0_i32 = arith.constant 0 : i32
    %c0_i32_0 = arith.constant 0 : i32
    return %arg0, %c0_i32 : i32, i32
  }
}

</mosaic_0001>

<bundles_post_ra>
// kernel: tpu_custom_call.1
= control target key start
LH: loop header
LB: loop body
LE: loop exit
PB: predicated region body
PF: predicated region fallthrough
CT: control target
= control target key end

     0   :  { %v630_v3 = vmov 0.0|0.0   ;;  %vm631_vm0 = vmmov 0   ;;  %v632_v6 = vmov 0.0   ;;  %s805_s0 = inlined_call_operand.vmem [shape: f32[8,64], index: 0, kind: input, shape index: {}]   ;;  %s806_s1 = inlined_call_operand.vmem [shape: f32[64,32], index: 1, kind: input, shape index: {}]   ;;  %s807_s2 = inlined_call_operand.vmem [shape: f32[1,32], index: 2, kind: input, shape index: {}]   ;;  %s808_s3 = inlined_call_operand.vmem [shape: f32[32,16], index: 3, kind: input, shape index: {}]   ;;  %s809_s4 = inlined_call_operand.vmem [shape: f32[1,16], index: 4, kind: input, shape index: {}]   ;;  %s810_s5 = inlined_call_operand.vmem [shape: f32[16,16], index: 5, kind: input, shape index: {}]   ;;  %s811_s6 = inlined_call_operand.vmem [shape: f32[1,16], index: 6, kind: input, shape index: {}]   ;;  %s812_s7 = inlined_call_operand.vmem [shape: f32[16,32], index: 7, kind: input, shape index: {}]   ;;  %s813_s8 = inlined_call_operand.vmem [shape: f32[1,32], index: 8, kind: input, shape index: {}]   ;;  %s814_s9 = inlined_call_operand.vmem [shape: f32[32,64], index: 9, kind: input, shape index: {}]   ;;  %s815_s10 = inlined_call_operand.vmem [shape: f32[1,64], index: 10, kind: input, shape index: {}]   ;;  %s816_s11 = inlined_call_operand.hbm [shape: f32[8,64], index: 11, kind: output, shape index: {}]  }
   0x1   :  { %v40_v0 = vld [vmem:[%s806_s1] sm:$0xff]  ;;  %v41_v1 = vld [vmem:[%s806_s1 + $0x8] sm:$0xff]  ;;  %v42_v2 = vld [vmem:[%s806_s1 + $0x10] sm:$0xff]  ;;  %572 = vmatprep.subr.bf16.mxu0 %v630_v3  ;;  %533 = vmatprep.mubr.msk.f32.mxu0 %vm631_vm0, %v632_v6 }
   0x2   :  { %v573_v4 = vpack.c.bf16 %v41_v1, %v40_v0  ;;  %v43_v5 = vld [vmem:[%s806_s1 + $0x18] sm:$0xff]  ;;  %584 = vmatprep.subr.bf16.mxu1 %v630_v3  ;;  %544 = vmatprep.mubr.msk.f32.mxu1 %vm631_vm0, %v632_v6  ;;  %v130_v8 = vld [vmem:[%s808_s3] sm:$0xff]  ;;  %v131_v9 = vld [vmem:[%s808_s3 + $0x8] sm:$0xff] }
   0x3   :  { %v576_v7 = vpack.c.bf16 %v43_v5, %v42_v2  ;;  %v44_v10 = vld [vmem:[%s806_s1 + $0x20] sm:$0xff]  ;;  %v45_v11 = vld [vmem:[%s806_s1 + $0x28] sm:$0xff]  ;;  %v585_v12 = vpack.c.bf16 %v131_v9, %v130_v8 }
   0x4   :  { %574 = vmatpush3.bf16.msra.mxu0 %v573_v4 }
   0x5   :  { %575 = vmatprep.subr.bf16.mxu0 %v630_v3 }
   0x6   :  { %16 = vsyncpa [#allocation3], 0  ;;  %586 = vmatpush3.bf16.msra.mxu1 %v585_v12  ;;  %v579_v13 = vpack.c.bf16 %v45_v11, %v44_v10  ;;  %v46_v14 = vld [vmem:[%s806_s1 + $0x30] sm:$0xff]  ;;  %v47_v15 = vld [vmem:[%s806_s1 + $0x38] sm:$0xff]  ;;  %vm55_vm1 = vcmask 523264   ;;  %vm141_vm2 = vcmask 261120  }
   0x7   :  { %587 = vmatprep.subr.bf16.mxu1 %v630_v3  ;;  %v582_v16 = vpack.c.bf16 %v47_v15, %v46_v14  ;;  %v39_v17 = vld [vmem:[%s805_s0] sm:$0xff]  ;;  %v132_v18 = vld [vmem:[%s808_s3 + $0x10] sm:$0xff]  ;;  %v133_v19 = vld [vmem:[%s808_s3 + $0x18] sm:$0xff]  ;;  %vm225_vm3 = vcmask 130048   ;;  %s633_s22 = smov [#allocation2]  }
   0x8   :  { %577 = vmatpush3.bf16.msra.mxu0 %v576_v7  ;;  %v588_v20 = vpack.c.bf16 %v133_v19, %v132_v18  ;;  %v482_v21 = vld [vmem:[%s807_s2] ss:$0 sm:$0xff]  ;;  %v217_v27 = vld [vmem:[%s810_s5 + $0x8] sm:$0xff]  ;;  %v385_v45 = vld [vmem:[%s814_s9 + $0x10] sm:$0xff]  ;;  %s474_s0 = sshll.u32 %s633_s22, 4  ;;  %s475_s0 = int_to_ptr.vmem [resolvable:$true] %s474_s0 }
   0x9   :  { %578 = vmatprep.subr.bf16.mxu0 %v630_v3  ;;  %v216_v26 = vld [vmem:[%s810_s5] sm:$0xff]  ;;  %v301_v35 = vld [vmem:[%s812_s7 + $0x8] sm:$0xff]  ;;  %v386_v46 = vld [vmem:[%s814_s9 + $0x18] sm:$0xff]  ;;  %p611_p1 = scmp.lt.s32.totalorder %s475_s0, %s475_s0 }
   0xa   :  { %589 = vmatpush3.bf16.msra.mxu1 %v588_v20  ;;  %v591_v28 = vpack.c.bf16 %v217_v27, %v216_v26  ;;  %v484_v29 = vld [vmem:[%s809_s4] ss:$0 sm:$0xff]  ;;  %v384_v38 = vld [vmem:[%s814_s9 + $0x8] sm:$0xff]  ;;  %v600_v47 = vpack.c.bf16 %v386_v46, %v385_v45 }
   0xb   :  { %590 = vmatprep.subr.bf16.mxu1 %v630_v3  ;;  %v300_v34 = vld [vmem:[%s812_s7] sm:$0xff] }
   0xc   :  { %580 = vmatpush3.bf16.msra.mxu0 %v579_v13  ;;  %v594_v36 = vpack.c.bf16 %v301_v35, %v300_v34  ;;  %v383_v37 = vld [vmem:[%s814_s9] sm:$0xff]  ;;  %s606_s9 = scalar_lea.vmem %s475_s0, 128 }
   0xd   :  { %581 = vmatprep.subr.bf16.mxu0 %v630_v3  ;;  %v597_v39 = vpack.c.bf16 %v384_v38, %v383_v37  ;;  %v486_v40 = vld [vmem:[%s811_s6] ss:$0 sm:$0xff]  ;;  %p607_p0 = scmp.ne.s32.totalorder %s475_s0, %s606_s9  ;;  %p612_p2 = scmp.lt.s32.totalorder %s606_s9, %s606_s9 }
   0xe   :  { %v488_v48 = vld [vmem:[%s813_s8] ss:$0 sm:$0xff] }
   0xf   :  { %v490_v53 = vld [vmem:[%s815_s10] ss:$0 sm:$0xff]  ;;  %p613_p3 = por %p612_p2, %p611_p1 }
  0x10   :  { %583 = vmatpush3.bf16.msra.mxu0 %v582_v16 }
  0x11   :  { %596 = vmatprep.subr.bf16.mxu0 %v630_v3  ;;  %p614_p4 = pnand %p613_p3, %p607_p0 }
  0x13   :  { %534 = vmatmul.mubr.msk.f32.vlgmr.msra.gmra.mrb[0].mxu0 %vm55_vm1, %v39_v17 }
  0x14   :  { %569 = vmatprep.mubr.msk.f32.mxu0 %vm631_vm0, %v632_v6  ;;  %598 = vmatpush3.bf16.msra.mxu0 %v597_v39 }
  0x15   :  { %599 = vmatprep.subr.bf16.mxu0 %v630_v3 }
  0x18   :  { %601 = vmatpush3.bf16.msra.mxu0 %v600_v47 }
  0xe6   :  { %v125_v22 = vpop.f32.mrb[0].mxu0 }
  0xe7   :  { %v126_v23 = vadd.f32 %v482_v21, %v125_v22  ;;  %v535_v24 = vpop.f32.mrb[1].mxu0 }
  0xe9   :  { %v129_v25 = vmax.f32 %v126_v23, 0.0 }
  0xeb   :  { %545 = vmatmul.mubr.msk.f32.vlgmr.msra.gmra.mrb[0].mxu1 %vm141_vm2, %v129_v25 }
  0xec   :  { %551 = vmatprep.mubr.msk.f32.mxu1 %vm631_vm0, %v632_v6  ;;  %592 = vmatpush3.bf16.msra.mxu1 %v591_v28 }
  0xed   :  { %593 = vmatprep.subr.bf16.mxu1 %v630_v3 }
 0x1be   :  { %v211_v30 = vpop.f32.mrb[0].mxu1 }
 0x1bf   :  { %v212_v31 = vadd.f32 %v484_v29, %v211_v30  ;;  %v546_v32 = vpop.f32.mrb[1].mxu1 }
 0x1c1   :  { %v215_v33 = vmax.f32 %v212_v31, 0.0 }
 0x1c3   :  { %552 = vmatmul.mubr.msk.f32.vlgmr.msra.gmra.mrb[2].mxu1 %vm225_vm3, %v215_v33 }
 0x1c4   :  { %558 = vmatprep.mubr.msk.f32.mxu1 %vm631_vm0, %v632_v6  ;;  %595 = vmatpush3.bf16.msra.mxu1 %v594_v36 }
 0x296   :  { %v295_v41 = vpop.f32.mrb[2].mxu1 }
 0x297   :  { %v296_v42 = vadd.f32 %v486_v40, %v295_v41  ;;  %v553_v43 = vpop.f32.mrb[3].mxu1 }
 0x299   :  { %v299_v44 = vmax.f32 %v296_v42, 0.0 }
 0x29b   :  { %559 = vmatmul.mubr.msk.f32.vlgmr.msra.gmra.mrb[4].mxu1 %vm225_vm3, %v299_v44 }
 0x36e   :  { %v378_v49 = vpop.f32.mrb[4].mxu1 }
 0x36f   :  { %v379_v50 = vadd.f32 %v488_v48, %v378_v49  ;;  %v560_v51 = vpop.f32.mrb[5].mxu1 }
 0x371   :  { %v382_v52 = vmax.f32 %v379_v50, 0.0 }
 0x373   :  { %570 = vmatmul.mubr.msk.f32.vlgmr.msra.gmra.mrb[2].mxu0 %vm141_vm2, %v382_v52 }
 0x446   :  { %v463_v54 = vpop.f32.mrb[2].mxu0 }
 0x447   :  { %v464_v55 = vadd.f32 %v490_v53, %v463_v54  ;;  %v571_v56 = vpop.f32.mrb[3].mxu0 }
 0x449   :  { %467 = vst.msk [vmem:[#allocation2] sm:$0xff] %vm55_vm1, %v464_v55 }
 0x44a   :  { %617 = shalt.err (!%p614_p4)
}
 0x44b   :  { %s618_s24 = scalar_lea.hbm %s816_s11, 128 }
 0x44c   :  { %p619_p5 = scmp.ne.s32.totalorder %s816_s11, %s618_s24  ;;  %p622_p6 = scmp.lt.u32.totalorder %s618_s24, %s816_s11 }
 0x44e   :  { %p624_p7 = pnand %p622_p6, %p619_p5 }
 0x450   :  { %627 = shalt.err (!%p624_p7)
}
 0x451   :  { %477 = dma.vmem_to_hbm [thread:$0]  %s475_s0, 128, %s816_s11, [#allocation3]  }
 0x452   :  { %628 = dma.done.wait [#allocation3], 128  }
 0x453   :  { %629 = vsyncadd [#allocation3], 4294967168 }
 0x454   :  { %481 = vsyncpa [#allocation3], 1 }

</bundles_post_ra>
